<compile_context>
chip_gen: v7x
topology: tpu7x:2x2x1
jax: 0.10.0
libtpu: 0.0.40
codegen_flags: <defaults>
</compile_context>

<pallas_src>
import functools

import jax
import jax.numpy as jnp
from jax.experimental import pallas as pl
from jax.experimental.pallas import tpu as pltpu


def _round_up(a, m):
    return (a + m - 1) // m * m


def _choose_spatial_tile(hw, cp, itemsize, budget_bytes=8 * 1024 * 1024):
    """Largest multiple-of-8 spatial tile s.t. double-buffered in + out blocks
    stay within a conservative VMEM budget (safe on v5e/v6e/v7x defaults)."""
    max_thw = budget_bytes // (4 * cp * itemsize)   # 2 bufs x (in + out)
    max_thw = max(8, (max_thw // 8) * 8)
    return int(min(_round_up(hw, 8), max_thw))


def _se_reduce_kernel(x_ref, w1_ref, b1_ref, w2t_ref, b2r_ref, s_ref, acc_ref,
                      *, inv_hw):
    # x_ref: (THW, Cp) spatial tile (channels on lanes)
    t = pl.program_id(1)

    @pl.when(t == 0)
    def _():
        acc_ref[...] = jnp.zeros_like(acc_ref)

    # Partial per-channel sums for this spatial tile (sublane reduce).
    acc_ref[...] += jnp.sum(x_ref[...].astype(jnp.float32), axis=0, keepdims=True)

    @pl.when(t == pl.num_programs(1) - 1)
    def _():
        y = acc_ref[...] * inv_hw                                       # (1, Cp) mean
        # fc1 (C -> Cr): VPU multiply + lane reduce (keep off the MXU).
        h = jnp.sum(w1_ref[...].astype(jnp.float32) * y, axis=-1, keepdims=True)
        h = jnp.maximum(h + b1_ref[...].astype(jnp.float32), 0.0)       # (Cr, 1)
        # fc2 (Cr -> C): VPU multiply + sublane reduce.
        s = jnp.sum(w2t_ref[...].astype(jnp.float32) * h, axis=0, keepdims=True)
        s_ref[...] = jax.nn.sigmoid(s + b2r_ref[...].astype(jnp.float32))


def _se_excite_kernel(x_ref, s_ref, o_ref):
    # x_ref: (THW, Cp), s_ref: (1, Cp) broadcast over sublanes.
    o_ref[...] = (x_ref[...].astype(jnp.float32) * s_ref[...]).astype(o_ref.dtype)


def se_layer(x, w1, b1, w2, b2):
    """Squeeze-and-Excitation forward.

    x : (B, C, H, W)
    w1: (Cr, C),  b1: (Cr, 1)   (Conv2d(C, Cr, 1) weights)
    w2: (C, Cr),  b2: (C, 1)    (Conv2d(Cr, C, 1) weights)
    """
    B, C, H, W = x.shape
    Cr = w1.shape[0]
    HW = H * W
    itemsize = jnp.dtype(x.dtype).itemsize

    Cp = _round_up(C, 128)                       # lane-dense channel dim
    THW = _choose_spatial_tile(HW, Cp, itemsize)
    HWp = _round_up(HW, THW)
    T = HWp // THW

    # NCHW -> channels-last (B, HW, C); pad spatial/channel dims with zeros.
    # (layout plumbing: reshape is free, transpose/pad are plain XLA ops)
    x_hwc = jnp.transpose(x.reshape(B, C, HW), (0, 2, 1))
    x_hwc = jnp.pad(x_hwc, ((0, 0), (0, HWp - HW), (0, Cp - C)))

    w1p = jnp.pad(w1, ((0, 0), (0, Cp - C)))                  # (Cr, Cp)
    b1p = b1.reshape(Cr, 1)                                   # (Cr, 1)
    w2tp = jnp.pad(w2.T, ((0, 0), (0, Cp - C)))               # (Cr, Cp)
    b2rp = jnp.pad(b2.reshape(1, C), ((0, 0), (0, Cp - C)))   # (1, Cp)

    # ---- pass 1: global average pool + tiny FC -> per-image scales ----------
    reduce_kernel = functools.partial(_se_reduce_kernel, inv_hw=1.0 / float(HW))
    scales = pl.pallas_call(
        reduce_kernel,
        out_shape=jax.ShapeDtypeStruct((B, 1, Cp), jnp.float32),
        grid_spec=pltpu.PrefetchScalarGridSpec(
            num_scalar_prefetch=0,
            grid=(B, T),
            in_specs=[
                pl.BlockSpec((None, THW, Cp), lambda b, t: (b, t, 0)),   # x
                pl.BlockSpec((Cr, Cp), lambda b, t: (0, 0)),             # w1
                pl.BlockSpec((Cr, 1), lambda b, t: (0, 0)),              # b1
                pl.BlockSpec((Cr, Cp), lambda b, t: (0, 0)),             # w2^T
                pl.BlockSpec((1, Cp), lambda b, t: (0, 0)),              # b2
            ],
            out_specs=pl.BlockSpec((None, 1, Cp), lambda b, t: (b, 0, 0)),
            scratch_shapes=[pltpu.VMEM((1, Cp), jnp.float32)],
        ),
        compiler_params=pltpu.CompilerParams(
            dimension_semantics=("parallel", "arbitrary")),
    )(x_hwc, w1p, b1p, w2tp, b2rp)

    # ---- pass 2: excite (broadcast multiply), in-place over x_hwc -----------
    out_hwc = pl.pallas_call(
        _se_excite_kernel,
        out_shape=jax.ShapeDtypeStruct((B, HWp, Cp), x.dtype),
        grid_spec=pltpu.PrefetchScalarGridSpec(
            num_scalar_prefetch=0,
            grid=(B, T),
            in_specs=[
                pl.BlockSpec((None, THW, Cp), lambda b, t: (b, t, 0)),   # x
                pl.BlockSpec((None, 1, Cp), lambda b, t: (b, 0, 0)),     # scales
            ],
            out_specs=pl.BlockSpec((None, THW, Cp), lambda b, t: (b, t, 0)),
        ),
        compiler_params=pltpu.CompilerParams(
            dimension_semantics=("parallel", "parallel")),
        input_output_aliases={0: 0},
    )(x_hwc, scales)

    out = out_hwc[:, :HW, :C]
    return jnp.transpose(out, (0, 2, 1)).reshape(B, C, H, W)


def se_layer_ref(x, w1, b1, w2, b2):
    """Pure-JAX reference of the PyTorch forward."""
    y = jnp.mean(x, axis=(2, 3))                                  # (B, C)
    h = jnp.maximum(y @ w1.T + b1[:, 0], 0.0)                     # (B, Cr)
    s = jax.nn.sigmoid(h @ w2.T + b2[:, 0])                       # (B, C)
    return x * s[:, :, None, None]


if __name__ == "__main__":
    se_fn = jax.jit(se_layer)
    key = jax.random.PRNGKey(0)

    # Test 1: lane-aligned channels (C multiple of 128), reduction=16 -> Cr=8.
    B, C, H, W = 2, 128, 16, 16
    Cr = C // 16
    kx, kw1, kb1, kw2, kb2, key = jax.random.split(key, 6)
    x = jax.random.normal(kx, (B, C, H, W), dtype=jnp.float32)
    w1 = jax.random.normal(kw1, (Cr, C), dtype=jnp.float32) * 0.1
    b1 = jax.random.normal(kb1, (Cr, 1), dtype=jnp.float32) * 0.1
    w2 = jax.random.normal(kw2, (C, Cr), dtype=jnp.float32) * 0.1
    b2 = jax.random.normal(kb2, (C, 1), dtype=jnp.float32) * 0.1

    out = se_fn(x, w1, b1, w2, b2)
    jax.block_until_ready(out)
    ref = se_layer_ref(x, w1, b1, w2, b2)
    assert out.shape == x.shape
    assert jnp.allclose(out, ref, atol=1e-5, rtol=1e-5), "mismatch (aligned case)"

    # Test 2: unaligned C (32) and HW (7*7=49) exercising the padding path.
    B2, C2, H2, W2 = 1, 32, 7, 7
    Cr2 = C2 // 16
    kx2, kw12, kb12, kw22, kb22, key = jax.random.split(key, 6)
    x2 = jax.random.normal(kx2, (B2, C2, H2, W2), dtype=jnp.float32)
    w12 = jax.random.normal(kw12, (Cr2, C2), dtype=jnp.float32) * 0.1
    b12 = jax.random.normal(kb12, (Cr2, 1), dtype=jnp.float32) * 0.1
    w22 = jax.random.normal(kw22, (C2, Cr2), dtype=jnp.float32) * 0.1
    b22 = jax.random.normal(kb22, (C2, 1), dtype=jnp.float32) * 0.1

    out2 = se_fn(x2, w12, b12, w22, b22)
    jax.block_until_ready(out2)
    ref2 = se_layer_ref(x2, w12, b12, w22, b22)
    assert out2.shape == x2.shape
    assert jnp.allclose(out2, ref2, atol=1e-5, rtol=1e-5), "mismatch (padded case)"

    print("KERNEL_OK")
</pallas_src>

<mosaic_0001>
module attributes {stable_mosaic.version = 11 : i64} {
  func.func @_se_excite_kernel(%arg0: i32, %arg1: i32, %arg2: memref<1x256x128xf32, #tpu.memory_space<vmem>>, %arg3: memref<1x1x128xf32, #tpu.memory_space<vmem>>, %arg4: memref<1x256x128xf32, #tpu.memory_space<vmem>>) attributes {dimension_semantics = [#tpu.dimension_semantics<parallel>, #tpu.dimension_semantics<parallel>], iteration_bounds = array<i64: 2, 1>, scalar_prefetch = 0 : i64, scratch_operands = 0 : i64, tpu.core_type = #tpu.core_type<tc>, window_params = [{transform_indices = @transform_0, window_bounds = array<i64: 1, 256, 128>}, {transform_indices = @transform_1, window_bounds = array<i64: 1, 1, 128>}, {transform_indices = @transform_2, window_bounds = array<i64: 1, 256, 128>}]} {
    %c0 = arith.constant 0 : index
    %c0_0 = arith.constant 0 : index
    %c0_1 = arith.constant 0 : index
    %0 = vector.load %arg2[%c0, %c0_0, %c0_1] : memref<1x256x128xf32, #tpu.memory_space<vmem>>, vector<1x256x128xf32>
    %1 = vector.shape_cast %0 : vector<1x256x128xf32> to vector<256x128xf32>
    %c0_2 = arith.constant 0 : index
    %c0_3 = arith.constant 0 : index
    %c0_4 = arith.constant 0 : index
    %2 = vector.load %arg3[%c0_2, %c0_3, %c0_4] : memref<1x1x128xf32, #tpu.memory_space<vmem>>, vector<1x1x128xf32>
    %3 = vector.shape_cast %2 : vector<1x1x128xf32> to vector<1x128xf32>
    %4 = vector.broadcast %3 : vector<1x128xf32> to vector<256x128xf32>
    %5 = arith.mulf %1, %4 : vector<256x128xf32>
    %c0_5 = arith.constant 0 : index
    %c0_6 = arith.constant 0 : index
    %c0_7 = arith.constant 0 : index
    %6 = vector.load %arg4[%c0_5, %c0_6, %c0_7] : memref<1x256x128xf32, #tpu.memory_space<vmem>>, vector<1x256x128xf32>
    %7 = vector.shape_cast %6 : vector<1x256x128xf32> to vector<256x128xf32>
    %8 = vector.shape_cast %5 : vector<256x128xf32> to vector<1x256x128xf32>
    tpu.vector_store %arg4[%c0_5, %c0_6, %c0_7], %8 {strides = array<i32>} : memref<1x256x128xf32, #tpu.memory_space<vmem>>, vector<1x256x128xf32>,
    return
  }
  func.func @transform_0(%arg0: i32, %arg1: i32) -> (i32, i32, i32) {
    %c0_i32 = arith.constant 0 : i32
    %c0_i32_0 = arith.constant 0 : i32
    return %arg0, %arg1, %c0_i32 : i32, i32, i32
  }
  func.func @transform_1(%arg0: i32, %arg1: i32) -> (i32, i32, i32) {
    %c0_i32 = arith.constant 0 : i32
    %c0_i32_0 = arith.constant 0 : i32
    %c0_i32_1 = arith.constant 0 : i32
    return %arg0, %c0_i32, %c0_i32_0 : i32, i32, i32
  }
  func.func @transform_2(%arg0: i32, %arg1: i32) -> (i32, i32, i32) {
    %c0_i32 = arith.constant 0 : i32
    %c0_i32_0 = arith.constant 0 : i32
    return %arg0, %arg1, %c0_i32 : i32, i32, i32
  }
}

module attributes {stable_mosaic.version = 11 : i64} {
  func.func @_se_reduce_kernel(%arg0: i32, %arg1: i32, %arg2: memref<1x256x128xf32, #tpu.memory_space<vmem>>, %arg3: memref<8x128xf32, #tpu.memory_space<vmem>>, %arg4: memref<8x1xf32, #tpu.memory_space<vmem>>, %arg5: memref<8x128xf32, #tpu.memory_space<vmem>>, %arg6: memref<1x128xf32, #tpu.memory_space<vmem>>, %arg7: memref<1x1x128xf32, #tpu.memory_space<vmem>>, %arg8: memref<1x128xf32, #tpu.memory_space<vmem>>) attributes {dimension_semantics = [#tpu.dimension_semantics<parallel>, #tpu.dimension_semantics<arbitrary>], iteration_bounds = array<i64: 2, 1>, scalar_prefetch = 0 : i64, scratch_operands = 1 : i64, tpu.core_type = #tpu.core_type<tc>, window_params = [{transform_indices = @transform_0, window_bounds = array<i64: 1, 256, 128>}, {pipeline_mode = #tpu.pipeline_mode<synchronous>, transform_indices = @transform_1, window_bounds = array<i64: 8, 128>}, {pipeline_mode = #tpu.pipeline_mode<synchronous>, transform_indices = @transform_2, window_bounds = array<i64: 8, 1>}, {pipeline_mode = #tpu.pipeline_mode<synchronous>, transform_indices = @transform_3, window_bounds = array<i64: 8, 128>}, {pipeline_mode = #tpu.pipeline_mode<synchronous>, transform_indices = @transform_4, window_bounds = array<i64: 1, 128>}, {transform_indices = @transform_5, window_bounds = array<i64: 1, 1, 128>}]} {
    %c0_i32 = arith.constant 0 : i32
    %0 = arith.cmpi eq, %arg1, %c0_i32 : i32
    %1 = arith.extui %0 : i1 to i32
    %c0_i32_0 = arith.constant 0 : i32
    %2 = arith.cmpi ne, %1, %c0_i32_0 : i32
    scf.if %2 {
      %cst_9 = arith.constant 0.000000e+00 : f32
      %13 = vector.broadcast %cst_9 : f32 to vector<1x128xf32>
      %c0_10 = arith.constant 0 : index
      %c0_11 = arith.constant 0 : index
      %14 = vector.load %arg8[%c0_10, %c0_11] : memref<1x128xf32, #tpu.memory_space<vmem>>, vector<1x128xf32>
      tpu.vector_store %arg8[%c0_10, %c0_11], %13 {strides = array<i32>} : memref<1x128xf32, #tpu.memory_space<vmem>>, vector<1x128xf32>,
    } else {
    }
    %c0 = arith.constant 0 : index
    %c0_1 = arith.constant 0 : index
    %3 = vector.load %arg8[%c0, %c0_1] : memref<1x128xf32, #tpu.memory_space<vmem>>, vector<1x128xf32>
    %c0_2 = arith.constant 0 : index
    %c0_3 = arith.constant 0 : index
    %c0_4 = arith.constant 0 : index
    %4 = vector.load %arg2[%c0_2, %c0_3, %c0_4] : memref<1x256x128xf32, #tpu.memory_space<vmem>>, vector<1x256x128xf32>
    %5 = vector.shape_cast %4 : vector<1x256x128xf32> to vector<256x128xf32>
    %cst = arith.constant dense<0.000000e+00> : vector<128xf32>
    %6 = vector.multi_reduction <add>, %5, %cst [0] : vector<256x128xf32> to vector<128xf32>
    %7 = vector.shape_cast %6 : vector<128xf32> to vector<1x128xf32>
    %8 = arith.addf %3, %7 : vector<1x128xf32>
    %c0_5 = arith.constant 0 : index
    %c0_6 = arith.constant 0 : index
    %9 = vector.load %arg8[%c0_5, %c0_6] : memref<1x128xf32, #tpu.memory_space<vmem>>, vector<1x128xf32>
    tpu.vector_store %arg8[%c0_5, %c0_6], %8 {strides = array<i32>} : memref<1x128xf32, #tpu.memory_space<vmem>>, vector<1x128xf32>,
    %c0_i32_7 = arith.constant 0 : i32
    %10 = arith.cmpi eq, %arg1, %c0_i32_7 : i32
    %11 = arith.extui %10 : i1 to i32
    %c0_i32_8 = arith.constant 0 : i32
    %12 = arith.cmpi ne, %11, %c0_i32_8 : i32
    scf.if %12 {
      %c0_9 = arith.constant 0 : index
      %c0_10 = arith.constant 0 : index
      %13 = vector.load %arg8[%c0_9, %c0_10] : memref<1x128xf32, #tpu.memory_space<vmem>>, vector<1x128xf32>
      %cst_11 = arith.constant 3.906250e-03 : f32
      %14 = vector.broadcast %cst_11 : f32 to vector<1x128xf32>
      %15 = arith.mulf %13, %14 : vector<1x128xf32>
      %c0_12 = arith.constant 0 : index
      %c0_13 = arith.constant 0 : index
      %16 = vector.load %arg3[%c0_12, %c0_13] : memref<8x128xf32, #tpu.memory_space<vmem>>, vector<8x128xf32>
      %17 = vector.broadcast %15 : vector<1x128xf32> to vector<8x128xf32>
      %18 = arith.mulf %16, %17 : vector<8x128xf32>
      %cst_14 = arith.constant dense<0.000000e+00> : vector<8xf32>
      %19 = vector.multi_reduction <add>, %18, %cst_14 [1] : vector<8x128xf32> to vector<8xf32>
      %20 = vector.shape_cast %19 : vector<8xf32> to vector<8x1xf32>
      %c0_15 = arith.constant 0 : index
      %c0_16 = arith.constant 0 : index
      %21 = vector.load %arg4[%c0_15, %c0_16] : memref<8x1xf32, #tpu.memory_space<vmem>>, vector<8x1xf32>
      %22 = arith.addf %20, %21 : vector<8x1xf32>
      %cst_17 = arith.constant 0.000000e+00 : f32
      %23 = vector.broadcast %cst_17 : f32 to vector<8x1xf32>
      %24 = arith.maximumf %22, %23 : vector<8x1xf32>
      %c0_18 = arith.constant 0 : index
      %c0_19 = arith.constant 0 : index
      %25 = vector.load %arg5[%c0_18, %c0_19] : memref<8x128xf32, #tpu.memory_space<vmem>>, vector<8x128xf32>
      %26 = vector.broadcast %24 : vector<8x1xf32> to vector<8x128xf32>
      %27 = arith.mulf %25, %26 : vector<8x128xf32>
      %cst_20 = arith.constant dense<0.000000e+00> : vector<128xf32>
      %28 = vector.multi_reduction <add>, %27, %cst_20 [0] : vector<8x128xf32> to vector<128xf32>
      %29 = vector.shape_cast %28 : vector<128xf32> to vector<1x128xf32>
      %c0_21 = arith.constant 0 : index
      %c0_22 = arith.constant 0 : index
      %30 = vector.load %arg6[%c0_21, %c0_22] : memref<1x128xf32, #tpu.memory_space<vmem>>, vector<1x128xf32>
      %31 = arith.addf %29, %30 : vector<1x128xf32>
      %32 = arith.negf %31 : vector<1x128xf32>
      %33 = math.exp %32 : vector<1x128xf32>
      %cst_23 = arith.constant 1.000000e+00 : f32
      %34 = vector.broadcast %cst_23 : f32 to vector<1x128xf32>
      %35 = arith.addf %34, %33 : vector<1x128xf32>
      %36 = arith.divf %34, %35 : vector<1x128xf32>
      %c0_24 = arith.constant 0 : index
      %c0_25 = arith.constant 0 : index
      %c0_26 = arith.constant 0 : index
      %37 = vector.load %arg7[%c0_24, %c0_25, %c0_26] : memref<1x1x128xf32, #tpu.memory_space<vmem>>, vector<1x1x128xf32>
      %38 = vector.shape_cast %37 : vector<1x1x128xf32> to vector<1x128xf32>
      %39 = vector.shape_cast %36 : vector<1x128xf32> to vector<1x1x128xf32>
      tpu.vector_store %arg7[%c0_24, %c0_25, %c0_26], %39 {strides = array<i32>} : memref<1x1x128xf32, #tpu.memory_space<vmem>>, vector<1x1x128xf32>,
    } else {
    }
    return
  }
  func.func @transform_0(%arg0: i32, %arg1: i32) -> (i32, i32, i32) {
    %c0_i32 = arith.constant 0 : i32
    %c0_i32_0 = arith.constant 0 : i32
    return %arg0, %arg1, %c0_i32 : i32, i32, i32
  }
  func.func @transform_1(%arg0: i32, %arg1: i32) -> (i32, i32) {
    %c0_i32 = arith.constant 0 : i32
    %c0_i32_0 = arith.constant 0 : i32
    %c0_i32_1 = arith.constant 0 : i32
    return %c0_i32, %c0_i32_0 : i32, i32
  }
  func.func @transform_2(%arg0: i32, %arg1: i32) -> (i32, i32) {
    %c0_i32 = arith.constant 0 : i32
    %c0_i32_0 = arith.constant 0 : i32
    %c0_i32_1 = arith.constant 0 : i32
    return %c0_i32, %c0_i32_0 : i32, i32
  }
  func.func @transform_3(%arg0: i32, %arg1: i32) -> (i32, i32) {
    %c0_i32 = arith.constant 0 : i32
    %c0_i32_0 = arith.constant 0 : i32
    %c0_i32_1 = arith.constant 0 : i32
    return %c0_i32, %c0_i32_0 : i32, i32
  }
  func.func @transform_4(%arg0: i32, %arg1: i32) -> (i32, i32) {
    %c0_i32 = arith.constant 0 : i32
    %c0_i32_0 = arith.constant 0 : i32
    %c0_i32_1 = arith.constant 0 : i32
    return %c0_i32, %c0_i32_0 : i32, i32
  }
  func.func @transform_5(%arg0: i32, %arg1: i32) -> (i32, i32, i32) {
    %c0_i32 = arith.constant 0 : i32
    %c0_i32_0 = arith.constant 0 : i32
    %c0_i32_1 = arith.constant 0 : i32
    return %arg0, %c0_i32, %c0_i32_0 : i32, i32, i32
  }
}

</mosaic_0001>

<bundles_post_ra>
// kernel: se_layer.3
= control target key start
LH: loop header
LB: loop body
LE: loop exit
PB: predicated region body
PF: predicated region fallthrough
CT: control target
= control target key end

     0   :  { %s473_s9 = smov 0   ;;  %s475_s10 = smov 0   ;;  %s619_s0 = inlined_call_operand.vmem [shape: f32[2,256,128], index: 0, kind: input, shape index: {}, may-alias: {0,2}]   ;;  %s620_s1 = inlined_call_operand.vmem [shape: f32[2,1,128], index: 1, kind: input, shape index: {}]   ;;  %s621_s2 = inlined_call_operand.vmem [shape: f32[2,256,128], index: 2, kind: output, shape index: {}, may-alias: {0,2}]  }
   0x1   :  { %s477_s11 = smov 0  }
   0x2 LB: > { %s24_s12 = sadd.s32 1, %s452_s10  ;;  %p400_p0 = scmp.ge.s32.totalorder %s456_s11, 1  ;;  %s456_s11 = sphi %s477_s11, %s12_s11   ;;  %s452_s10 = sphi %s475_s10, %s623_s10   ;;  %s448_s9 = sphi %s473_s9, %s622_s9  }
   0x3   : > { %p26_p1 = scmp.ge.s32.totalorder %s24_s12, 2  ;;  %p141_p2 = scmp.lt.s32.totalorder %s456_s11, 3 }
   0x5   : > { %s625_s12 = smov (%p26_p1, %s24_s12), 0  ;;  %p142_p3 = pnand %p400_p0, %p141_p2 }
   0x6   : > { %p175_p4 = scmp.lt.s32.totalorder (!%p142_p3), %s448_s9, 1 }
   0x7   : > { %145 = sbr.rel (%p142_p3) target bundleno = 44 (0x2c), region = 28 }
   0xe   : > { %s627_s9 = smov (!%p175_p4, %s448_s9), 1 }
   0xf   : > { %s408_s13 = sshll.u32 %s627_s9, 8  ;;  %s186_s16 = scalar_lea.vmem %s620_s1, %s627_s9 }
  0x10   : > { %s503_s19 = scalar_lea.vmem %s619_s0, %s408_s13  ;;  %v505_v0 = vld [vmem:[%s186_s16] ss:$0 sm:$0xff]  ;;  %s557_s22 = scalar_lea.vmem %s621_s2, %s408_s13 }
  0x11   : > { %v197_v1 = vld [vmem:[%s503_s19] sm:$0xff]  ;;  %v198_v2 = vld [vmem:[%s503_s19 + $0x8] sm:$0xff]  ;;  %v199_v3 = vld [vmem:[%s503_s19 + $0x10] sm:$0xff] }
  0x12   : > { %v200_v4 = vld [vmem:[%s503_s19 + $0x18] sm:$0xff]  ;;  %v201_v5 = vld [vmem:[%s503_s19 + $0x20] sm:$0xff]  ;;  %v202_v6 = vld [vmem:[%s503_s19 + $0x28] sm:$0xff]  ;;  %v236_v10 = vmul.f32 %v505_v0, %v197_v1  ;;  %v237_v14 = vmul.f32 %v505_v0, %v198_v2  ;;  %v238_v15 = vmul.f32 %v505_v0, %v199_v3 }
  0x13   : > { %v203_v7 = vld [vmem:[%s503_s19 + $0x30] sm:$0xff]  ;;  %v204_v8 = vld [vmem:[%s503_s19 + $0x38] sm:$0xff]  ;;  %v205_v9 = vld [vmem:[%s503_s19 + $0x40] sm:$0xff]  ;;  %v239_v16 = vmul.f32 %v505_v0, %v200_v4  ;;  %v240_v17 = vmul.f32 %v505_v0, %v201_v5  ;;  %v241_v21 = vmul.f32 %v505_v0, %v202_v6 }
  0x14   : > { %v206_v11 = vld [vmem:[%s503_s19 + $0x48] sm:$0xff]  ;;  %v207_v12 = vld [vmem:[%s503_s19 + $0x50] sm:$0xff]  ;;  %v208_v13 = vld [vmem:[%s503_s19 + $0x58] sm:$0xff]  ;;  %v242_v22 = vmul.f32 %v505_v0, %v203_v7  ;;  %v243_v23 = vmul.f32 %v505_v0, %v204_v8  ;;  %v244_v24 = vmul.f32 %v505_v0, %v205_v9 }
  0x15   : > { %v209_v18 = vld [vmem:[%s503_s19 + $0x60] sm:$0xff]  ;;  %v210_v19 = vld [vmem:[%s503_s19 + $0x68] sm:$0xff]  ;;  %v211_v20 = vld [vmem:[%s503_s19 + $0x70] sm:$0xff]  ;;  %v245_v28 = vmul.f32 %v505_v0, %v206_v11  ;;  %v246_v29 = vmul.f32 %v505_v0, %v207_v12  ;;  %v247_v30 = vmul.f32 %v505_v0, %v208_v13 }
  0x16   : > { %v212_v25 = vld [vmem:[%s503_s19 + $0x78] sm:$0xff]  ;;  %v213_v26 = vld [vmem:[%s503_s19 + $0x80] sm:$0xff]  ;;  %v214_v27 = vld [vmem:[%s503_s19 + $0x88] sm:$0xff]  ;;  %v248_v31 = vmul.f32 %v505_v0, %v209_v18  ;;  %v249_v35 = vmul.f32 %v505_v0, %v210_v19  ;;  %v250_v36 = vmul.f32 %v505_v0, %v211_v20 }
  0x17   : > { %v215_v32 = vld [vmem:[%s503_s19 + $0x90] sm:$0xff]  ;;  %v216_v33 = vld [vmem:[%s503_s19 + $0x98] sm:$0xff]  ;;  %v217_v34 = vld [vmem:[%s503_s19 + $0xa0] sm:$0xff]  ;;  %v251_v37 = vmul.f32 %v505_v0, %v212_v25  ;;  %v252_v38 = vmul.f32 %v505_v0, %v213_v26  ;;  %v253_v42 = vmul.f32 %v505_v0, %v214_v27 }
  0x18   : > { %v218_v39 = vld [vmem:[%s503_s19 + $0xa8] sm:$0xff]  ;;  %v219_v40 = vld [vmem:[%s503_s19 + $0xb0] sm:$0xff]  ;;  %v220_v41 = vld [vmem:[%s503_s19 + $0xb8] sm:$0xff]  ;;  %v254_v43 = vmul.f32 %v505_v0, %v215_v32  ;;  %v255_v44 = vmul.f32 %v505_v0, %v216_v33  ;;  %v256_v45 = vmul.f32 %v505_v0, %v217_v34 }
  0x19   : > { %v221_v46 = vld [vmem:[%s503_s19 + $0xc0] sm:$0xff]  ;;  %v222_v47 = vld [vmem:[%s503_s19 + $0xc8] sm:$0xff]  ;;  %v223_v48 = vld [vmem:[%s503_s19 + $0xd0] sm:$0xff]  ;;  %v257_v49 = vmul.f32 %v505_v0, %v218_v39  ;;  %v258_v50 = vmul.f32 %v505_v0, %v219_v40  ;;  %v259_v51 = vmul.f32 %v505_v0, %v220_v41 }
  0x1a   : > { %v224_v52 = vld [vmem:[%s503_s19 + $0xd8] sm:$0xff]  ;;  %v225_v53 = vld [vmem:[%s503_s19 + $0xe0] sm:$0xff]  ;;  %v226_v54 = vld [vmem:[%s503_s19 + $0xe8] sm:$0xff]  ;;  %v260_v55 = vmul.f32 %v505_v0, %v221_v46  ;;  %v261_v56 = vmul.f32 %v505_v0, %v222_v47  ;;  %v262_v57 = vmul.f32 %v505_v0, %v223_v48 }
  0x1b   : > { %v227_v58 = vld [vmem:[%s503_s19 + $0xf0] sm:$0xff]  ;;  %v228_v59 = vld [vmem:[%s503_s19 + $0xf8] sm:$0xff]  ;;  %v263_v60 = vmul.f32 %v505_v0, %v224_v52  ;;  %v264_v61 = vmul.f32 %v505_v0, %v225_v53  ;;  %v265_v62 = vmul.f32 %v505_v0, %v226_v54 }
  0x1c   : > { %268 = vst [vmem:[%s557_s22] sm:$0xff] %v236_v10  ;;  %269 = vst [vmem:[%s557_s22 + $0x8] sm:$0xff] %v237_v14  ;;  %v266_v63 = vmul.f32 %v505_v0, %v227_v58  ;;  %v267_v1 = vmul.f32 %v505_v0, %v228_v59 }
  0x1d   : > { %270 = vst [vmem:[%s557_s22 + $0x10] sm:$0xff] %v238_v15  ;;  %271 = vst [vmem:[%s557_s22 + $0x18] sm:$0xff] %v239_v16 }
  0x1e   : > { %272 = vst [vmem:[%s557_s22 + $0x20] sm:$0xff] %v240_v17  ;;  %273 = vst [vmem:[%s557_s22 + $0x28] sm:$0xff] %v241_v21 }
  0x1f   : > { %274 = vst [vmem:[%s557_s22 + $0x30] sm:$0xff] %v242_v22  ;;  %275 = vst [vmem:[%s557_s22 + $0x38] sm:$0xff] %v243_v23 }
  0x20   : > { %276 = vst [vmem:[%s557_s22 + $0x40] sm:$0xff] %v244_v24  ;;  %277 = vst [vmem:[%s557_s22 + $0x48] sm:$0xff] %v245_v28 }
  0x21   : > { %278 = vst [vmem:[%s557_s22 + $0x50] sm:$0xff] %v246_v29  ;;  %279 = vst [vmem:[%s557_s22 + $0x58] sm:$0xff] %v247_v30 }
  0x22   : > { %280 = vst [vmem:[%s557_s22 + $0x60] sm:$0xff] %v248_v31  ;;  %281 = vst [vmem:[%s557_s22 + $0x68] sm:$0xff] %v249_v35 }
  0x23   : > { %282 = vst [vmem:[%s557_s22 + $0x70] sm:$0xff] %v250_v36  ;;  %283 = vst [vmem:[%s557_s22 + $0x78] sm:$0xff] %v251_v37 }
  0x24   : > { %284 = vst [vmem:[%s557_s22 + $0x80] sm:$0xff] %v252_v38  ;;  %285 = vst [vmem:[%s557_s22 + $0x88] sm:$0xff] %v253_v42 }
  0x25   : > { %286 = vst [vmem:[%s557_s22 + $0x90] sm:$0xff] %v254_v43  ;;  %287 = vst [vmem:[%s557_s22 + $0x98] sm:$0xff] %v255_v44 }
  0x26   : > { %288 = vst [vmem:[%s557_s22 + $0xa0] sm:$0xff] %v256_v45  ;;  %289 = vst [vmem:[%s557_s22 + $0xa8] sm:$0xff] %v257_v49 }
  0x27   : > { %290 = vst [vmem:[%s557_s22 + $0xb0] sm:$0xff] %v258_v50  ;;  %291 = vst [vmem:[%s557_s22 + $0xb8] sm:$0xff] %v259_v51 }
  0x28   : > { %292 = vst [vmem:[%s557_s22 + $0xc0] sm:$0xff] %v260_v55  ;;  %293 = vst [vmem:[%s557_s22 + $0xc8] sm:$0xff] %v261_v56 }
  0x29   : > { %294 = vst [vmem:[%s557_s22 + $0xd0] sm:$0xff] %v262_v57  ;;  %295 = vst [vmem:[%s557_s22 + $0xd8] sm:$0xff] %v263_v60 }
  0x2a   : > { %296 = vst [vmem:[%s557_s22 + $0xe0] sm:$0xff] %v264_v61  ;;  %297 = vst [vmem:[%s557_s22 + $0xe8] sm:$0xff] %v265_v62 }
  0x2b   : > { %298 = vst [vmem:[%s557_s22 + $0xf0] sm:$0xff] %v266_v63  ;;  %299 = vst [vmem:[%s557_s22 + $0xf8] sm:$0xff] %v267_v1 }
  0x2c PF: > { %s12_s11 = sadd.s32 1, %s456_s11   ;;  %s622_s9 = smov %s452_s10 }
  0x2d   : > { %p9_p5 = scmp.ge.s32.totalorder %s12_s11, 4   ;;  %s623_s10 = smov %s625_s12 }
  0x2f   :  { %11 = sbr.rel (!%p9_p5) target bundleno = 2 (0x2), region = 61 }

// kernel: se_layer.2
= control target key start
LH: loop header
LB: loop body
LE: loop exit
PB: predicated region body
PF: predicated region fallthrough
CT: control target
= control target key end

     0   :  { %s525_s18 = smov 0   ;;  %s527_s19 = smov 0   ;;  %s608_s0 = inlined_call_operand.vmem [shape: f32[2,256,128], index: 0, kind: input, shape index: {}]   ;;  %s609_s1 = inlined_call_operand.vmem [shape: f32[8,128], index: 1, kind: input, shape index: {}]   ;;  %s610_s2 = inlined_call_operand.vmem [shape: f32[8,1], index: 2, kind: input, shape index: {}]   ;;  %s611_s3 = inlined_call_operand.vmem [shape: f32[8,128], index: 3, kind: input, shape index: {}]   ;;  %s612_s4 = inlined_call_operand.vmem [shape: f32[1,128], index: 4, kind: input, shape index: {}]   ;;  %s613_s5 = inlined_call_operand.vmem [shape: f32[2,1,128], index: 5, kind: output, shape index: {}]  }
   0x1   :  { %s529_s20 = smov 0  }
   0x2 LB: > { %s27_s21 = sadd.s32 1, %s487_s19  ;;  %p431_p0 = scmp.ge.s32.totalorder %s491_s20, 1  ;;  %s491_s20 = sphi %s529_s20, %s15_s20   ;;  %s487_s19 = sphi %s527_s19, %s615_s19   ;;  %s483_s18 = sphi %s525_s18, %s614_s18  }
   0x3   : > { %p29_p1 = scmp.ge.s32.totalorder %s27_s21, 2  ;;  %p206_p2 = scmp.lt.s32.totalorder %s491_s20, 3 }
   0x5   : > { %s617_s21 = smov (%p29_p1, %s27_s21), 0  ;;  %p207_p3 = pnand %p431_p0, %p206_p2 }
   0x6   : > { %p237_p4 = scmp.lt.s32.totalorder (!%p207_p3), %s483_s18, 1  ;;  %v493_v0 = vmov (!%p207_p3), 0.0  }
   0x7   : > { %210 = sbr.rel (%p207_p3) target bundleno = 425 (0x1a9), region = 40  ;;  %253 = vst [vmem:[#allocation2] sm:$0x1] (!%p207_p3), %v493_v0 }
   0xe   : > { %s619_s18 = smov (!%p237_p4, %s483_s18), 1 }
   0xf   : > { %s437_s22 = sshll.u32 %s619_s18, 8  ;;  %s248_s11 = scalar_lea.vmem %s613_s5, %s619_s18 }
  0x10   : > { %s549_s25 = scalar_lea.vmem %s608_s0, %s437_s22 }
  0x11   : > { %v255_v1 = vld [vmem:[%s549_s25] sm:$0xff]  ;;  %v256_v2 = vld [vmem:[%s549_s25 + $0x8] sm:$0xff]  ;;  %v257_v3 = vld [vmem:[%s549_s25 + $0x10] sm:$0xff] }
  0x12   : > { %v287_v4 = vadd.f32 %v256_v2, %v255_v1  ;;  %v258_v5 = vld [vmem:[%s549_s25 + $0x18] sm:$0xff]  ;;  %v259_v7 = vld [vmem:[%s549_s25 + $0x20] sm:$0xff]  ;;  %v260_v9 = vld [vmem:[%s549_s25 + $0x28] sm:$0xff] }
  0x13   : > { %v261_v11 = vld [vmem:[%s549_s25 + $0x30] sm:$0xff]  ;;  %v262_v13 = vld [vmem:[%s549_s25 + $0x38] sm:$0xff]  ;;  %v263_v15 = vld [vmem:[%s549_s25 + $0x40] sm:$0xff] }
  0x14   : > { %v288_v6 = vadd.f32 %v287_v4, %v257_v3  ;;  %v264_v17 = vld [vmem:[%s549_s25 + $0x48] sm:$0xff]  ;;  %v265_v19 = vld [vmem:[%s549_s25 + $0x50] sm:$0xff]  ;;  %v266_v21 = vld [vmem:[%s549_s25 + $0x58] sm:$0xff] }
  0x15   : > { %v267_v23 = vld [vmem:[%s549_s25 + $0x60] sm:$0xff]  ;;  %v268_v25 = vld [vmem:[%s549_s25 + $0x68] sm:$0xff]  ;;  %v269_v27 = vld [vmem:[%s549_s25 + $0x70] sm:$0xff] }
  0x16   : > { %v289_v8 = vadd.f32 %v288_v6, %v258_v5  ;;  %v270_v29 = vld [vmem:[%s549_s25 + $0x78] sm:$0xff]  ;;  %v271_v31 = vld [vmem:[%s549_s25 + $0x80] sm:$0xff]  ;;  %v272_v33 = vld [vmem:[%s549_s25 + $0x88] sm:$0xff] }
  0x17   : > { %v273_v35 = vld [vmem:[%s549_s25 + $0x90] sm:$0xff]  ;;  %v274_v37 = vld [vmem:[%s549_s25 + $0x98] sm:$0xff]  ;;  %v275_v39 = vld [vmem:[%s549_s25 + $0xa0] sm:$0xff] }
  0x18   : > { %v290_v10 = vadd.f32 %v289_v8, %v259_v7  ;;  %v276_v41 = vld [vmem:[%s549_s25 + $0xa8] sm:$0xff]  ;;  %v277_v43 = vld [vmem:[%s549_s25 + $0xb0] sm:$0xff]  ;;  %v278_v45 = vld [vmem:[%s549_s25 + $0xb8] sm:$0xff]  ;;  %v333_v8 = vlaneseq }
  0x19   : > { %v279_v47 = vld [vmem:[%s549_s25 + $0xc0] sm:$0xff]  ;;  %v280_v49 = vld [vmem:[%s549_s25 + $0xc8] sm:$0xff]  ;;  %v281_v51 = vld [vmem:[%s549_s25 + $0xd0] sm:$0xff] }
  0x1a   : > { %v291_v12 = vadd.f32 %v290_v10, %v260_v9  ;;  %v282_v53 = vld [vmem:[%s549_s25 + $0xd8] sm:$0xff]  ;;  %v283_v55 = vld [vmem:[%s549_s25 + $0xe0] sm:$0xff]  ;;  %v284_v57 = vld [vmem:[%s549_s25 + $0xe8] sm:$0xff]  ;;  %v334_v9 = vshrl.u32 %v333_v8, 7 }
  0x1b   : > { %v285_v59 = vld [vmem:[%s549_s25 + $0xf0] sm:$0xff]  ;;  %v286_v61 = vld [vmem:[%s549_s25 + $0xf8] sm:$0xff]  ;;  %v254_v5 = vld [vmem:[#allocation2] sm:$0x1] }
  0x1c   : > { %v292_v14 = vadd.f32 %v291_v12, %v261_v11  ;;  %v335_v10 = vsub.s32 0, %v334_v9 }
  0x1e   : > { %v293_v16 = vadd.f32 %v292_v14, %v262_v13  ;;  %v331_v13 = vld [vmem:[%s609_s1] sm:$0xff] }
  0x20   : > { %v294_v18 = vadd.f32 %v293_v16, %v263_v15  ;;  %v494_v16 = vmov 0  }
  0x21   : > { %464 = vset.pattern.permute.xlu0 %v494_v16 }
  0x22   : > { %v295_v20 = vadd.f32 %v294_v18, %v264_v17  ;;  %v341_v17 = vld [vmem:[%s610_s2] sm:$0xff] }
  0x24   : > { %v296_v22 = vadd.f32 %v295_v20, %v265_v19 }
  0x26   : > { %v297_v24 = vadd.f32 %v296_v22, %v266_v21  ;;  %v344_v21 = vld [vmem:[%s611_s3] sm:$0xff] }
  0x28   : > { %v298_v26 = vadd.f32 %v297_v24, %v267_v23 }
  0x2a   : > { %v299_v28 = vadd.f32 %v298_v26, %v268_v25 }
  0x2c   : > { %v300_v30 = vadd.f32 %v299_v28, %v269_v27 }
  0x2e   : > { %v301_v32 = vadd.f32 %v300_v30, %v270_v29  ;;  %v357_v29 = vld [vmem:[%s612_s4] sm:$0x1] }
  0x30   : > { %v302_v34 = vadd.f32 %v301_v32, %v271_v31 }
  0x32   : > { %v303_v36 = vadd.f32 %v302_v34, %v272_v33 }
  0x34   : > { %v304_v38 = vadd.f32 %v303_v36, %v273_v35 }
  0x36   : > { %v305_v40 = vadd.f32 %v304_v38, %v274_v37 }
  0x38   : > { %v306_v42 = vadd.f32 %v305_v40, %v275_v39 }
  0x3a   : > { %v307_v44 = vadd.f32 %v306_v42, %v276_v41 }
  0x3c   : > { %v308_v46 = vadd.f32 %v307_v44, %v277_v43 }
  0x3e   : > { %v309_v48 = vadd.f32 %v308_v46, %v278_v45 }
  0x40   : > { %v310_v50 = vadd.f32 %v309_v48, %v279_v47 }
  0x42   : > { %v311_v52 = vadd.f32 %v310_v50, %v280_v49 }
  0x44   : > { %v312_v54 = vadd.f32 %v311_v52, %v281_v51 }
  0x46   : > { %v313_v56 = vadd.f32 %v312_v54, %v282_v53 }
  0x48   : > { %v314_v58 = vadd.f32 %v313_v56, %v283_v55 }
  0x4a   : > { %v315_v60 = vadd.f32 %v314_v58, %v284_v57 }
  0x4c   : > { %v316_v62 = vadd.f32 %v315_v60, %v285_v59 }
  0x4e   : > { %v317_v63 = vadd.f32 %v316_v62, %v286_v61 }
  0x50   : > { %v318_v0 = vrot.slane %v317_v63, 4 }
  0x52   : > { %v319_v1 = vadd.f32 %v318_v0, %v317_v63 }
  0x54   : > { %v320_v2 = vrot.slane %v319_v1, 2 }
  0x56   : > { %v321_v3 = vadd.f32 %v320_v2, %v319_v1 }
  0x58   : > { %v322_v4 = vrot.slane %v321_v3, 1 }
  0x5a   : > { %v323_v6 = vadd.f32 %v322_v4, %v321_v3 }
  0x5c   : > { %v324_v7 = vadd.f32 %v323_v6, %v254_v5 }
  0x5e   : > { %325 = vst [vmem:[#allocation2] sm:$0x1] %v324_v7 }
  0x65   : > { %v329_v11 = vld [vmem:[#allocation2] sm:$0x1] }
  0x66   : > { %v330_v12 = vmul.f32 0.00390625, %v329_v11 }
  0x68   : > { %v336_v14 = vrot.slane %v330_v12, %v335_v10 }
  0x6a   : > { %v338_v15 = vmul.f32 %v336_v14, %v331_v13 }
  0x6c   : > { %339 = vadd.xlane.f32.xlu0 %v338_v15 }
  0xf9   : > { %v340_v18 = vpop.xlane.xlu0 %339 }
  0xfa   : > { %v342_v19 = vadd.f32 %v341_v17, %v340_v18 }
  0xfc   : > { %v343_v20 = vmax.f32 %v342_v19, 0.0 }
  0xfe   : > { %347 = vperm.xlu0 %464, %v343_v20  }
 0x17d   : > { %v348_v22 = vpop.permute.xlu0 %347 }
 0x17e   : > { %v350_v23 = vmul.f32 %v348_v22, %v344_v21 }
 0x180   : > { %v351_v24 = vrot.slane %v350_v23, 4 }
 0x182   : > { %v352_v25 = vadd.f32 %v351_v24, %v350_v23 }
 0x184   : > { %v353_v26 = vrot.slane %v352_v25, 2 }
 0x186   : > { %v354_v27 = vadd.f32 %v353_v26, %v352_v25 }
 0x188   : > { %v355_v28 = vrot.slane %v354_v27, 1 }
 0x18a   : > { %v356_v30 = vadd.f32 %v355_v28, %v354_v27 }
 0x18c   : > { %v358_v31 = vadd.f32 %v357_v29, %v356_v30 }
 0x18e   : > { %v434_v32 = vmul.f32 -1.442695, %v358_v31 }
 0x190   : > { %465 = vpow2.f32 %v434_v32 }
 0x19a   : > { %v466_v33 = vpop.eup %465 }
 0x19b   : > { %v362_v34 = vadd.f32 1.0, %v466_v33 }
 0x19d   : > { %467 = vrcp.f32 %v362_v34 }
 0x1a7   : > { %v468_v35 = vpop.eup %467 }
 0x1a8   : > { %365 = vst [vmem:[%s248_s11] sm:$0x1] %v468_v35 }
 0x1a9 PF: > { %s15_s20 = sadd.s32 1, %s491_s20   ;;  %s614_s18 = smov %s487_s19 }
 0x1aa   : > { %p12_p5 = scmp.ge.s32.totalorder %s15_s20, 4   ;;  %s615_s19 = smov %s617_s21 }
 0x1ac   :  { %14 = sbr.rel (!%p12_p5) target bundleno = 2 (0x2), region = 78 }

</bundles_post_ra>
